<compile_context>
chip_gen: v5e
topology: v5e:2x2
jax: 0.10.0
libtpu: 0.0.40
codegen_flags: <defaults>
</compile_context>

<pallas_src>
import jax
import jax.numpy as jnp
from jax.experimental import pallas as pl
from jax.experimental.pallas import tpu as pltpu

LATENT_DIM = 20
HIDDEN_DIM = 128
OUT_DIM = 784
OUT_PAD = 896          # 7 * 128 -> lane-dense output stores


def _round_up(x, m):
    return ((x + m - 1) // m) * m


def decoder_kernel(x_ref, w1_ref, b1_ref, w2_ref, b2_ref, o_ref, h_ref):
    # x_ref:  (TB, 20)  bf16      w1_ref: (20, 128)  bf16    b1_ref: (1, 128)  f32
    # w2_ref: (128, 896) bf16     b2_ref: (1, 896)   f32     o_ref:  (TB, 896) f32
    # h_ref:  (TB, 128) f32 VMEM scratch (planned home for the hidden activation)

    # Linear 1 (bf16 MXU, f32 accumulate) + bias + ReLU in f32
    h = jnp.dot(x_ref[...], w1_ref[...], preferred_element_type=jnp.float32)
    h_ref[...] = jnp.maximum(h + b1_ref[...], 0.0)

    # Linear 2 (bf16 MXU, f32 accumulate) + bias, lane-dense 896-wide store
    hb = h_ref[...].astype(jnp.bfloat16)
    y = jnp.dot(hb, w2_ref[...], preferred_element_type=jnp.float32)
    o_ref[...] = (y + b2_ref[...]).astype(o_ref.dtype)


def decoder_forward(x, w1, b1, w2, b2, *, block_b=512):
    """x: (B, 20) float32; w1/w2: bf16 (in, out); b1/b2: f32 (1, out) -> (B, 784) f32."""
    B = x.shape[0]

    # Batch tile: clamp so tiny batches run as a single grid step.
    TB = min(block_b, _round_up(B, 8))
    B_pad = _round_up(B, TB)

    # Cast activations to bf16 once; zero-pad ragged batch.
    xp = x.astype(jnp.bfloat16)
    if B_pad != B:
        xp = jnp.pad(xp, ((0, B_pad - B), (0, 0)))

    # Pad output feature dim 784 -> 896 with zero columns (numerically inert).
    w2p = jnp.pad(w2, ((0, 0), (0, OUT_PAD - OUT_DIM)))
    b2p = jnp.pad(b2, ((0, 0), (0, OUT_PAD - OUT_DIM)))

    grid = (B_pad // TB,)

    flops = 2 * B_pad * (LATENT_DIM * HIDDEN_DIM + HIDDEN_DIM * OUT_PAD)
    bytes_accessed = (
        B_pad * LATENT_DIM * 2            # x (bf16)
        + LATENT_DIM * HIDDEN_DIM * 2     # w1 (bf16)
        + HIDDEN_DIM * 4                  # b1 (f32)
        + HIDDEN_DIM * OUT_PAD * 2        # w2 (bf16)
        + OUT_PAD * 4                     # b2 (f32)
        + B_pad * OUT_PAD * 4             # output (f32)
    )

    out = pl.pallas_call(
        decoder_kernel,
        out_shape=jax.ShapeDtypeStruct((B_pad, OUT_PAD), jnp.float32),
        grid=grid,
        in_specs=[
            pl.BlockSpec((TB, LATENT_DIM), lambda i: (i, 0)),          # x: per-tile
            pl.BlockSpec((LATENT_DIM, HIDDEN_DIM), lambda i: (0, 0)),  # w1: resident
            pl.BlockSpec((1, HIDDEN_DIM), lambda i: (0, 0)),           # b1: resident
            pl.BlockSpec((HIDDEN_DIM, OUT_PAD), lambda i: (0, 0)),     # w2: resident
            pl.BlockSpec((1, OUT_PAD), lambda i: (0, 0)),              # b2: resident
        ],
        out_specs=pl.BlockSpec((TB, OUT_PAD), lambda i: (i, 0)),
        scratch_shapes=[pltpu.VMEM((TB, HIDDEN_DIM), jnp.float32)],
        compiler_params=pltpu.CompilerParams(dimension_semantics=("parallel",)),
        cost_estimate=pl.CostEstimate(
            flops=flops, transcendentals=0, bytes_accessed=bytes_accessed),
    )(xp, w1, b1, w2p, b2p)

    return out[:B, :OUT_DIM]


def init_params(key):
    """Init mimicking nn.Linear default U[-1/sqrt(fan_in), +1/sqrt(fan_in)].
    Weights stored pre-transposed (in, out) and in bf16 (MXU operand dtype);
    biases in f32."""
    k1, k2, k3, k4 = jax.random.split(key, 4)
    bound1 = 1.0 / jnp.sqrt(LATENT_DIM)
    bound2 = 1.0 / jnp.sqrt(HIDDEN_DIM)
    w1 = jax.random.uniform(k1, (LATENT_DIM, HIDDEN_DIM), jnp.float32,
                            -bound1, bound1).astype(jnp.bfloat16)
    b1 = jax.random.uniform(k2, (1, HIDDEN_DIM), jnp.float32, -bound1, bound1)
    w2 = jax.random.uniform(k3, (HIDDEN_DIM, OUT_DIM), jnp.float32,
                            -bound2, bound2).astype(jnp.bfloat16)
    b2 = jax.random.uniform(k4, (1, OUT_DIM), jnp.float32, -bound2, bound2)
    return w1, b1, w2, b2


def decoder_ref(x, w1, b1, w2, b2):
    """Pure-JAX reference with matching precision (bf16 operands, f32 accum)."""
    h = jnp.dot(x.astype(jnp.bfloat16), w1,
                preferred_element_type=jnp.float32) + b1
    h = jnp.maximum(h, 0.0)
    y = jnp.dot(h.astype(jnp.bfloat16), w2,
                preferred_element_type=jnp.float32) + b2
    return y


if __name__ == "__main__":
    key = jax.random.PRNGKey(0)
    kx, kp = jax.random.split(key)
    w1, b1, w2, b2 = init_params(kp)

    # Small batch (single grid step, block == full array).
    batch = 8
    x = jax.random.normal(kx, (batch, LATENT_DIM), jnp.float32)
    out = jax.block_until_ready(decoder_forward(x, w1, b1, w2, b2))
    ref = decoder_ref(x, w1, b1, w2, b2)
    assert out.shape == (batch, OUT_DIM), out.shape
    assert jnp.allclose(out, ref, atol=1e-2, rtol=1e-2), "mismatch vs reference (B=8)"

    # Ragged batch exercising the multi-step batch grid + padding path.
    batch2 = 40
    x2 = jax.random.normal(kx, (batch2, LATENT_DIM), jnp.float32)
    out2 = jax.block_until_ready(decoder_forward(x2, w1, b1, w2, b2, block_b=16))
    ref2 = decoder_ref(x2, w1, b1, w2, b2)
    assert out2.shape == (batch2, OUT_DIM), out2.shape
    assert jnp.allclose(out2, ref2, atol=1e-2, rtol=1e-2), "mismatch vs reference (B=40)"

    print("KERNEL_OK")
</pallas_src>

<mosaic_0001>
module attributes {stable_mosaic.version = 11 : i64} {
  func.func @decoder_kernel(%arg0: i32, %arg1: memref<8x20xbf16, #tpu.memory_space<vmem>>, %arg2: memref<20x128xbf16, #tpu.memory_space<vmem>>, %arg3: memref<1x128xf32, #tpu.memory_space<vmem>>, %arg4: memref<128x896xbf16, #tpu.memory_space<vmem>>, %arg5: memref<1x896xf32, #tpu.memory_space<vmem>>, %arg6: memref<8x896xf32, #tpu.memory_space<vmem>>, %arg7: memref<8x128xf32, #tpu.memory_space<vmem>>) attributes {dimension_semantics = [#tpu.dimension_semantics<parallel>], iteration_bounds = array<i64: 1>, scalar_prefetch = 0 : i64, scratch_operands = 1 : i64, tpu.core_type = #tpu.core_type<tc>, window_params = [{transform_indices = @transform_0, window_bounds = array<i64: 8, 20>}, {pipeline_mode = #tpu.pipeline_mode<synchronous>, transform_indices = @transform_1, window_bounds = array<i64: 20, 128>}, {pipeline_mode = #tpu.pipeline_mode<synchronous>, transform_indices = @transform_2, window_bounds = array<i64: 1, 128>}, {pipeline_mode = #tpu.pipeline_mode<synchronous>, transform_indices = @transform_3, window_bounds = array<i64: 128, 896>}, {pipeline_mode = #tpu.pipeline_mode<synchronous>, transform_indices = @transform_4, window_bounds = array<i64: 1, 896>}, {transform_indices = @transform_5, window_bounds = array<i64: 8, 896>}]} {
    %c0 = arith.constant 0 : index
    %c0_0 = arith.constant 0 : index
    %0 = vector.load %arg1[%c0, %c0_0] : memref<8x20xbf16, #tpu.memory_space<vmem>>, vector<8x20xbf16>
    %c0_1 = arith.constant 0 : index
    %c0_2 = arith.constant 0 : index
    %1 = vector.load %arg2[%c0_1, %c0_2] : memref<20x128xbf16, #tpu.memory_space<vmem>>, vector<20x128xbf16>
    %cst = arith.constant dense<0.000000e+00> : vector<8x128xf32>
    %2 = tpu.matmul %0, %1, %cst {dimension_numbers = #tpu.dot_dimension_numbers<[1], [0], [0], [1], [0, 0, 1, 1], [], []>} : vector<8x20xbf16>, vector<20x128xbf16>, vector<8x128xf32> -> vector<8x128xf32>
    %c0_3 = arith.constant 0 : index
    %c0_4 = arith.constant 0 : index
    %3 = vector.load %arg3[%c0_3, %c0_4] : memref<1x128xf32, #tpu.memory_space<vmem>>, vector<1x128xf32>
    %4 = vector.broadcast %3 : vector<1x128xf32> to vector<8x128xf32>
    %5 = arith.addf %2, %4 : vector<8x128xf32>
    %cst_5 = arith.constant 0.000000e+00 : f32
    %6 = vector.broadcast %cst_5 : f32 to vector<8x128xf32>
    %7 = arith.maximumf %5, %6 : vector<8x128xf32>
    %c0_6 = arith.constant 0 : index
    %c0_7 = arith.constant 0 : index
    %8 = vector.load %arg7[%c0_6, %c0_7] : memref<8x128xf32, #tpu.memory_space<vmem>>, vector<8x128xf32>
    tpu.vector_store %arg7[%c0_6, %c0_7], %7 {strides = array<i32>} : memref<8x128xf32, #tpu.memory_space<vmem>>, vector<8x128xf32>,
    %c0_8 = arith.constant 0 : index
    %c0_9 = arith.constant 0 : index
    %9 = vector.load %arg7[%c0_8, %c0_9] : memref<8x128xf32, #tpu.memory_space<vmem>>, vector<8x128xf32>
    %10 = arith.truncf %9 : vector<8x128xf32> to vector<8x128xbf16>
    %c0_10 = arith.constant 0 : index
    %c0_11 = arith.constant 0 : index
    %11 = vector.load %arg4[%c0_10, %c0_11] : memref<128x896xbf16, #tpu.memory_space<vmem>>, vector<128x896xbf16>
    %cst_12 = arith.constant dense<0.000000e+00> : vector<8x896xf32>
    %12 = tpu.matmul %10, %11, %cst_12 {dimension_numbers = #tpu.dot_dimension_numbers<[1], [0], [0], [1], [0, 0, 1, 1], [], []>} : vector<8x128xbf16>, vector<128x896xbf16>, vector<8x896xf32> -> vector<8x896xf32>
    %c0_13 = arith.constant 0 : index
    %c0_14 = arith.constant 0 : index
    %13 = vector.load %arg5[%c0_13, %c0_14] : memref<1x896xf32, #tpu.memory_space<vmem>>, vector<1x896xf32>
    %14 = vector.broadcast %13 : vector<1x896xf32> to vector<8x896xf32>
    %15 = arith.addf %12, %14 : vector<8x896xf32>
    %c0_15 = arith.constant 0 : index
    %c0_16 = arith.constant 0 : index
    %16 = vector.load %arg6[%c0_15, %c0_16] : memref<8x896xf32, #tpu.memory_space<vmem>>, vector<8x896xf32>
    tpu.vector_store %arg6[%c0_15, %c0_16], %15 {strides = array<i32>} : memref<8x896xf32, #tpu.memory_space<vmem>>, vector<8x896xf32>,
    return
  }
  func.func @transform_0(%arg0: i32) -> (i32, i32) {
    %c0_i32 = arith.constant 0 : i32
    %c0_i32_0 = arith.constant 0 : i32
    return %arg0, %c0_i32 : i32, i32
  }
  func.func @transform_1(%arg0: i32) -> (i32, i32) {
    %c0_i32 = arith.constant 0 : i32
    %c0_i32_0 = arith.constant 0 : i32
    %c0_i32_1 = arith.constant 0 : i32
    return %c0_i32, %c0_i32_0 : i32, i32
  }
  func.func @transform_2(%arg0: i32) -> (i32, i32) {
    %c0_i32 = arith.constant 0 : i32
    %c0_i32_0 = arith.constant 0 : i32
    %c0_i32_1 = arith.constant 0 : i32
    return %c0_i32, %c0_i32_0 : i32, i32
  }
  func.func @transform_3(%arg0: i32) -> (i32, i32) {
    %c0_i32 = arith.constant 0 : i32
    %c0_i32_0 = arith.constant 0 : i32
    %c0_i32_1 = arith.constant 0 : i32
    return %c0_i32, %c0_i32_0 : i32, i32
  }
  func.func @transform_4(%arg0: i32) -> (i32, i32) {
    %c0_i32 = arith.constant 0 : i32
    %c0_i32_0 = arith.constant 0 : i32
    %c0_i32_1 = arith.constant 0 : i32
    return %c0_i32, %c0_i32_0 : i32, i32
  }
  func.func @transform_5(%arg0: i32) -> (i32, i32) {
    %c0_i32 = arith.constant 0 : i32
    %c0_i32_0 = arith.constant 0 : i32
    return %arg0, %c0_i32 : i32, i32
  }
}

</mosaic_0001>

<bundles_post_ra>
// kernel: tpu_custom_call.1
= control target key start
LH: loop header
LB: loop body
LE: loop exit
PB: predicated region body
PF: predicated region fallthrough
CT: control target
= control target key end

     0   :  { %10 = vsyncpa [#allocation4], 0  ;;  %s1091_s0 = inlined_call_operand.hbm [shape: bf16[8,20], index: 0, kind: input, shape index: {}]   ;;  %s1092_s1 = inlined_call_operand.hbm [shape: bf16[20,128], index: 1, kind: input, shape index: {}]   ;;  %s1093_s2 = inlined_call_operand.vmem [shape: f32[1,128], index: 2, kind: input, shape index: {}]   ;;  %s1094_s3 = inlined_call_operand.hbm [shape: bf16[128,896], index: 3, kind: input, shape index: {}]   ;;  %s1095_s4 = inlined_call_operand.hbm [shape: f32[1,896], index: 4, kind: input, shape index: {}]   ;;  %s1096_s5 = inlined_call_operand.hbm [shape: f32[8,896], index: 5, kind: output, shape index: {}]  }
   0x1   :  { %11 = vsyncpa [#allocation7], 0 }
   0x2   :  { %12 = vsyncpa [#allocation10], 0  ;;  %s29_s20 = sshll.u32 %s1092_s1, 4  ;;  %s30_s20 = int_to_ptr.hbm [resolvable:$true] %s29_s20 }
   0x3   :  { %13 = vsyncpa [#allocation5], 0  ;;  %s1032_s21 = smov [#allocation6]   ;;  %s19_s25 = sshll.u32 %s1091_s0, 4  ;;  %s20_s25 = int_to_ptr.hbm [resolvable:$true] %s19_s25 }
   0x4   :  { %s31_s22 = sshll.u32 %s1032_s21, 4  ;;  %s1033_s26 = smov 64   ;;  %s32_s22 = int_to_ptr.vmem [resolvable:$true] %s31_s22 }
   0x5   :  { %s1034_s27 = smov 4   ;;  %s1035_s28 = smov [#allocation3]  }
   0x6   :  { %37 = dma.hbm_to_vmem [thread:$0]  %s30_s20, 192, %s32_s22, [#allocation7], %s1033_s26, %s1033_s26, %s1034_s27  }
   0x7   :  { %s21_s29 = sshll.u32 %s1035_s28, 4  ;;  %s44_s7 = sshll.u32 %s1094_s3, 4  ;;  %s22_s29 = int_to_ptr.vmem [resolvable:$true] %s21_s29  ;;  %s45_s7 = int_to_ptr.hbm [resolvable:$true] %s44_s7 }
   0x8   :  { %24 = dma.hbm_to_vmem [thread:$0]  %s20_s25, 64, %s22_s29, [#allocation4]  }
   0x9   :  { %s1036_s1 = smov [#allocation8]   ;;  %s58_s0 = sshll.u32 %s1095_s4, 4  ;;  %s59_s0 = int_to_ptr.hbm [resolvable:$true] %s58_s0 }
   0xa   :  { %s46_s8 = sshll.u32 %s1036_s1, 4  ;;  %s1037_s11 = smov 448   ;;  %s47_s8 = int_to_ptr.vmem [resolvable:$true] %s46_s8 }
   0xb   :  { %s1038_s12 = smov 28   ;;  %s1039_s13 = smov [#allocation9]  }
   0xc   :  { %52 = dma.hbm_to_vmem [thread:$0]  %s45_s7, 7168, %s47_s8, [#allocation7], %s1037_s11, %s1037_s11, %s1038_s12  }
   0xd   :  { %s60_s14 = sshll.u32 %s1039_s13, 4  ;;  %s61_s14 = int_to_ptr.vmem [resolvable:$true] %s60_s14 }
   0xe   :  { %63 = dma.hbm_to_vmem [thread:$0]  %s59_s0, 112, %s61_s14, [#allocation10]  }
   0xf   :  { %1024 = dma.done.wait [#allocation4], 64  }
  0x10   :  { %1025 = vsyncadd [#allocation4], 4294967232 }
  0x11   :  { %1026 = dma.done.wait [#allocation7], 7360  }
  0x12   :  { %1027 = vsyncadd [#allocation7], 4294959936 }
  0x13   :  { %1028 = dma.done.wait [#allocation10], 112  }
  0x14   :  { %1029 = vsyncadd [#allocation10], 4294967184  ;;  %v84_v0 = vld [vmem:[#allocation6 + $0x8] sm:$0x3]  ;;  %vm102_vm0 = vcmask 1041408   ;;  %v837_v24 = vld [vmem:[#allocation6] sm:$0xff] }
  0x15   :  { %v94_v1 = vunpack.c.l.b16 %v84_v0  ;;  %v811_v2 = vld [vmem:[#allocation8 + $0x188] sm:$0xf]  ;;  %v890_v3 = vld [vmem:[#allocation8 + $0x1a0] sm:$0xf0]  ;;  %v887_v4 = vld [vmem:[#allocation8 + $0x18c] sm:$0xf] }
  0x16   :  { %v812_v5 = vor.u32 %v890_v3, %v811_v2  ;;  %v813_v6 = vld [vmem:[#allocation8 + $0x1a4] sm:$0xf0]  ;;  %v819_v7 = vld [vmem:[#allocation8 + $0x190] sm:$0xf]  ;;  %v891_v8 = vld [vmem:[#allocation8 + $0x1a8] sm:$0xf0] }
  0x17   :  { %v96_v9 = vpack.c.b16 %v94_v1, %v94_v1  ;;  %v816_v10 = vor.u32 %v887_v4, %v813_v6  ;;  %v820_v11 = vor.u32 %v891_v8, %v819_v7  ;;  %v783_v12 = vld [vmem:[#allocation8 + $0x150] sm:$0xf]  ;;  %v883_v13 = vld [vmem:[#allocation8 + $0x168] sm:$0xf0]  ;;  %v880_v14 = vld [vmem:[#allocation8 + $0x154] sm:$0xf] }
  0x18   :  { %491 = vmatpush.bf16.msra.mxu1 %v812_v5  ;;  %v784_v15 = vor.u32 %v883_v13, %v783_v12  ;;  %v785_v16 = vld [vmem:[#allocation8 + $0x16c] sm:$0xf0]  ;;  %v791_v17 = vld [vmem:[#allocation8 + $0x158] sm:$0xf]  ;;  %v884_v18 = vld [vmem:[#allocation8 + $0x170] sm:$0xf0] }
  0x19   :  { %v104_v19 = vsel %vm102_vm0, %v96_v9, 0  ;;  %504 = vmatpush.bf16.msra.mxu2 %v816_v10  ;;  %517 = vmatpush.bf16.msra.mxu3 %v820_v11  ;;  %v788_v20 = vor.u32 %v880_v14, %v785_v16  ;;  %v792_v21 = vor.u32 %v884_v18, %v791_v17  ;;  %v755_v22 = vld [vmem:[#allocation8 + $0x118] sm:$0xf]  ;;  %v876_v23 = vld [vmem:[#allocation8 + $0x130] sm:$0xf0]  ;;  %vm98_vm1 = vcmask 162816  }
  0x1a   :  { %112 = vmatpush.bf16.msra.mxu0 %v104_v19  ;;  %v873_v25 = vld [vmem:[#allocation8 + $0x11c] sm:$0xf]  ;;  %v757_v26 = vld [vmem:[#allocation8 + $0x134] sm:$0xf0]  ;;  %v763_v27 = vld [vmem:[#allocation8 + $0x120] sm:$0xf]  ;;  %v756_v29 = vor.u32 %v876_v23, %v755_v22 }
  0x1b   :  { %v877_v28 = vld [vmem:[#allocation8 + $0x138] sm:$0xf0]  ;;  %v727_v30 = vld [vmem:[#allocation8 + $0xe0] sm:$0xf]  ;;  %v760_v31 = vor.u32 %v873_v25, %v757_v26  ;;  %v888_v33 = vld [vmem:[#allocation8 + $0x194] sm:$0xf] }
  0x1c   :  { %492 = vmatpush.bf16.msra.mxu1 %v784_v15  ;;  %v869_v32 = vld [vmem:[#allocation8 + $0xf8] sm:$0xf0]  ;;  %v821_v34 = vld [vmem:[#allocation8 + $0x1ac] sm:$0xf0]  ;;  %v764_v36 = vor.u32 %v877_v28, %v763_v27  ;;  %v866_v37 = vld [vmem:[#allocation8 + $0xe4] sm:$0xf] }
  0x1d   :  { %505 = vmatpush.bf16.msra.mxu2 %v788_v20  ;;  %518 = vmatpush.bf16.msra.mxu3 %v792_v21  ;;  %v81_v35 = vld [vmem:[#allocation3] sm:$0xf]  ;;  %v729_v38 = vld [vmem:[#allocation8 + $0xfc] sm:$0xf0]  ;;  %v824_v39 = vor.u32 %v888_v33, %v821_v34  ;;  %v735_v40 = vld [vmem:[#allocation8 + $0xe8] sm:$0xf]  ;;  %v728_v42 = vor.u32 %v869_v32, %v727_v30 }
  0x1e   :  { %113 = vmatpush.bf16.msra.mxu0 %v837_v24  ;;  %v870_v41 = vld [vmem:[#allocation8 + $0x100] sm:$0xf0]  ;;  %v881_v43 = vld [vmem:[#allocation8 + $0x15c] sm:$0xf]  ;;  %v793_v44 = vld [vmem:[#allocation8 + $0x174] sm:$0xf0]  ;;  %v732_v45 = vor.u32 %v866_v37, %v729_v38 }
  0x1f   :  { %v699_v46 = vld [vmem:[#allocation8 + $0xa8] sm:$0xf]  ;;  %v862_v47 = vld [vmem:[#allocation8 + $0xc0] sm:$0xf0]  ;;  %v796_v48 = vor.u32 %v881_v43, %v793_v44  ;;  %v736_v49 = vor.u32 %v870_v41, %v735_v40  ;;  %v859_v50 = vld [vmem:[#allocation8 + $0xac] sm:$0xf] }
  0x20   :  { %493 = vmatpush.bf16.msra.mxu1 %v756_v29  ;;  %v701_v51 = vld [vmem:[#allocation8 + $0xc4] sm:$0xf0]  ;;  %v874_v52 = vld [vmem:[#allocation8 + $0x124] sm:$0xf]  ;;  %v707_v53 = vld [vmem:[#allocation8 + $0xb0] sm:$0xf]  ;;  %v700_v56 = vor.u32 %v862_v47, %v699_v46 }
  0x21   :  { %612 = vmatmul.msk.bf16.vlgmr.msra.gmra.mxu0 %vm98_vm1, %v81_v35  ;;  %506 = vmatpush.bf16.msra.mxu2 %v760_v31  ;;  %v863_v54 = vld [vmem:[#allocation8 + $0xc8] sm:$0xf0]  ;;  %v765_v55 = vld [vmem:[#allocation8 + $0x13c] sm:$0xf0]  ;;  %v671_v57 = vld [vmem:[#allocation8 + $0x70] sm:$0xf]  ;;  %v704_v59 = vor.u32 %v859_v50, %v701_v51 }
  0x22   :  { %530 = vmatpush.bf16.msrb.mxu0 %v824_v39  ;;  %519 = vmatpush.bf16.msra.mxu3 %v764_v36  ;;  %v768_v58 = vor.u32 %v874_v52, %v765_v55  ;;  %v855_v60 = vld [vmem:[#allocation8 + $0x88] sm:$0xf0]  ;;  %v737_v62 = vld [vmem:[#allocation8 + $0x104] sm:$0xf0]  ;;  %v708_v63 = vor.u32 %v863_v54, %v707_v53  ;;  %v852_v0 = vld [vmem:[#allocation8 + $0x74] sm:$0xf] }
  0x23   :  { %v867_v61 = vld [vmem:[#allocation8 + $0xec] sm:$0xf]  ;;  %v673_v1 = vld [vmem:[#allocation8 + $0x8c] sm:$0xf0]  ;;  %v679_v2 = vld [vmem:[#allocation8 + $0x78] sm:$0xf]  ;;  %v672_v4 = vor.u32 %v855_v60, %v671_v57 }
  0x24   :  { %494 = vmatpush.bf16.msra.mxu1 %v728_v42  ;;  %v856_v3 = vld [vmem:[#allocation8 + $0x90] sm:$0xf0]  ;;  %v643_v5 = vld [vmem:[#allocation8 + $0x38] sm:$0xf]  ;;  %v740_v6 = vor.u32 %v867_v61, %v737_v62  ;;  %v676_v7 = vor.u32 %v852_v0, %v673_v1  ;;  %v709_v10 = vld [vmem:[#allocation8 + $0xcc] sm:$0xf0] }
  0x25   :  { %507 = vmatpush.bf16.msra.mxu2 %v732_v45  ;;  %v848_v8 = vld [vmem:[#allocation8 + $0x50] sm:$0xf0]  ;;  %v680_v11 = vor.u32 %v856_v3, %v679_v2  ;;  %v845_v12 = vld [vmem:[#allocation8 + $0x3c] sm:$0xf]  ;;  %v645_v13 = vld [vmem:[#allocation8 + $0x54] sm:$0xf0] }
  0x26   :  { %531 = vmatpush.bf16.msrb.mxu0 %v796_v48  ;;  %520 = vmatpush.bf16.msra.mxu3 %v736_v49  ;;  %v860_v9 = vld [vmem:[#allocation8 + $0xb4] sm:$0xf]  ;;  %v651_v14 = vld [vmem:[#allocation8 + $0x40] sm:$0xf]  ;;  %v849_v15 = vld [vmem:[#allocation8 + $0x58] sm:$0xf0]  ;;  %v644_v17 = vor.u32 %v848_v8, %v643_v5  ;;  %v648_v22 = vor.u32 %v845_v12, %v645_v13 }
  0x27   :  { %v615_v16 = vld [vmem:[#allocation8] sm:$0xf]  ;;  %v841_v18 = vld [vmem:[#allocation8 + $0x18] sm:$0xf0]  ;;  %v838_v19 = vld [vmem:[#allocation8 + $0x4] sm:$0xf]  ;;  %v712_v21 = vor.u32 %v860_v9, %v709_v10  ;;  %v652_v25 = vor.u32 %v849_v15, %v651_v14 }
  0x28   :  { %495 = vmatpush.bf16.msra.mxu1 %v700_v56  ;;  %v617_v20 = vld [vmem:[#allocation8 + $0x1c] sm:$0xf0]  ;;  %v853_v23 = vld [vmem:[#allocation8 + $0x7c] sm:$0xf]  ;;  %v681_v24 = vld [vmem:[#allocation8 + $0x94] sm:$0xf0]  ;;  %v616_v32 = vor.u32 %v841_v18, %v615_v16 }
  0x29   :  { %508 = vmatpush.bf16.msra.mxu2 %v704_v59  ;;  %v623_v26 = vld [vmem:[#allocation8 + $0x8] sm:$0xf]  ;;  %v827_v27 = vld [vmem:[#allocation8 + $0x198] sm:$0xf]  ;;  %v892_v28 = vld [vmem:[#allocation8 + $0x1b0] sm:$0xf0]  ;;  %v684_v35 = vor.u32 %v853_v23, %v681_v24  ;;  %v620_v36 = vor.u32 %v838_v19, %v617_v20 }
  0x2a   :  { %532 = vmatpush.bf16.msrb.mxu0 %v768_v58  ;;  %521 = vmatpush.bf16.msra.mxu3 %v708_v63  ;;  %v842_v29 = vld [vmem:[#allocation8 + $0x20] sm:$0xf0]  ;;  %v889_v30 = vld [vmem:[#allocation8 + $0x19c] sm:$0xf]  ;;  %v829_v31 = vld [vmem:[#allocation8 + $0x1b4] sm:$0xf0]  ;;  %v828_v37 = vor.u32 %v892_v28, %v827_v27 }
  0x2b   :  { %v835_v33 = vld [vmem:[#allocation8 + $0x1a0] sm:$0xf]  ;;  %v893_v34 = vld [vmem:[#allocation8 + $0x1b8] sm:$0xf0]  ;;  %v624_v38 = vor.u32 %v842_v29, %v623_v26  ;;  %v832_v39 = vor.u32 %v889_v30, %v829_v31  ;;  %v882_v43 = vld [vmem:[#allocation8 + $0x164] sm:$0xf] }
  0x2c   :  { %496 = vmatpush.bf16.msra.mxu1 %v672_v4  ;;  %v799_v40 = vld [vmem:[#allocation8 + $0x160] sm:$0xf]  ;;  %v885_v41 = vld [vmem:[#allocation8 + $0x178] sm:$0xf0]  ;;  %v836_v42 = vor.u32 %v893_v34, %v835_v33  ;;  %v807_v45 = vld [vmem:[#allocation8 + $0x168] sm:$0xf] }
  0x2d   :  { %509 = vmatpush.bf16.msra.mxu2 %v676_v7  ;;  %v801_v44 = vld [vmem:[#allocation8 + $0x17c] sm:$0xf0]  ;;  %v886_v46 = vld [vmem:[#allocation8 + $0x180] sm:$0xf0]  ;;  %v800_v47 = vor.u32 %v885_v41, %v799_v40  ;;  %v771_v52 = vld [vmem:[#allocation8 + $0x128] sm:$0xf] }
  0x2e   :  { %533 = vmatpush.bf16.msrb.mxu0 %v740_v6  ;;  %522 = vmatpush.bf16.msra.mxu3 %v680_v11  ;;  %v804_v48 = vor.u32 %v882_v43, %v801_v44  ;;  %v808_v49 = vor.u32 %v886_v46, %v807_v45  ;;  %v846_v50 = vld [vmem:[#allocation8 + $0x44] sm:$0xf]  ;;  %v653_v51 = vld [vmem:[#allocation8 + $0x5c] sm:$0xf0]  ;;  %v875_v55 = vld [vmem:[#allocation8 + $0x12c] sm:$0xf] }
  0x2f   :  { %v656_v53 = vor.u32 %v846_v50, %v653_v51  ;;  %v878_v54 = vld [vmem:[#allocation8 + $0x140] sm:$0xf0]  ;;  %v773_v56 = vld [vmem:[#allocation8 + $0x144] sm:$0xf0]  ;;  %v779_v59 = vld [vmem:[#allocation8 + $0x130] sm:$0xf] }
  0x30   :  { %497 = vmatpush.bf16.msra.mxu1 %v644_v17  ;;  %v772_v57 = vor.u32 %v878_v54, %v771_v52  ;;  %v776_v58 = vor.u32 %v875_v55, %v773_v56  ;;  %v879_v60 = vld [vmem:[#allocation8 + $0x148] sm:$0xf0]  ;;  %v625_v63 = vld [vmem:[#allocation8 + $0x24] sm:$0xf0]  ;;  %v743_v0 = vld [vmem:[#allocation8 + $0xf0] sm:$0xf] }
  0x31   :  { %510 = vmatpush.bf16.msra.mxu2 %v648_v22  ;;  %v780_v61 = vor.u32 %v879_v60, %v779_v59  ;;  %v839_v62 = vld [vmem:[#allocation8 + $0xc] sm:$0xf]  ;;  %v868_v3 = vld [vmem:[#allocation8 + $0xf4] sm:$0xf]  ;;  %v745_v4 = vld [vmem:[#allocation8 + $0x10c] sm:$0xf0] }
  0x32   :  { %534 = vmatpush.bf16.msrb.mxu0 %v712_v21  ;;  %523 = vmatpush.bf16.msra.mxu3 %v652_v25  ;;  %v628_v1 = vor.u32 %v839_v62, %v625_v63  ;;  %v871_v2 = vld [vmem:[#allocation8 + $0x108] sm:$0xf0]  ;;  %v748_v6 = vor.u32 %v868_v3, %v745_v4  ;;  %v751_v7 = vld [vmem:[#allocation8 + $0xf8] sm:$0xf]  ;;  %v872_v8 = vld [vmem:[#allocation8 + $0x110] sm:$0xf0] }
  0x33   :  { %v744_v5 = vor.u32 %v871_v2, %v743_v0  ;;  %v752_v9 = vor.u32 %v872_v8, %v751_v7  ;;  %v715_v10 = vld [vmem:[#allocation8 + $0xb8] sm:$0xf]  ;;  %v864_v11 = vld [vmem:[#allocation8 + $0xd0] sm:$0xf0]  ;;  %v861_v12 = vld [vmem:[#allocation8 + $0xbc] sm:$0xf] }
  0x34   :  { %498 = vmatpush.bf16.msra.mxu1 %v616_v32  ;;  %v716_v13 = vor.u32 %v864_v11, %v715_v10  ;;  %v717_v14 = vld [vmem:[#allocation8 + $0xd4] sm:$0xf0]  ;;  %v723_v15 = vld [vmem:[#allocation8 + $0xc0] sm:$0xf]  ;;  %v865_v16 = vld [vmem:[#allocation8 + $0xd8] sm:$0xf0] }
  0x35   :  { %511 = vmatpush.bf16.msra.mxu2 %v620_v36  ;;  %v720_v17 = vor.u32 %v861_v12, %v717_v14  ;;  %v724_v18 = vor.u32 %v865_v16, %v723_v15  ;;  %v687_v19 = vld [vmem:[#allocation8 + $0x80] sm:$0xf]  ;;  %v857_v20 = vld [vmem:[#allocation8 + $0x98] sm:$0xf0]  ;;  %v854_v21 = vld [vmem:[#allocation8 + $0x84] sm:$0xf] }
  0x36   :  { %535 = vmatpush.bf16.msrb.mxu0 %v684_v35  ;;  %524 = vmatpush.bf16.msra.mxu3 %v624_v38  ;;  %v688_v22 = vor.u32 %v857_v20, %v687_v19  ;;  %v689_v23 = vld [vmem:[#allocation8 + $0x9c] sm:$0xf0]  ;;  %v695_v24 = vld [vmem:[#allocation8 + $0x88] sm:$0xf]  ;;  %v858_v25 = vld [vmem:[#allocation8 + $0xa0] sm:$0xf0] }
  0x37   :  { %v692_v26 = vor.u32 %v854_v21, %v689_v23  ;;  %v696_v27 = vor.u32 %v858_v25, %v695_v24  ;;  %v659_v28 = vld [vmem:[#allocation8 + $0x48] sm:$0xf]  ;;  %v850_v29 = vld [vmem:[#allocation8 + $0x60] sm:$0xf0]  ;;  %v847_v30 = vld [vmem:[#allocation8 + $0x4c] sm:$0xf] }
  0x38   :  { %543 = vmatpush.bf16.msrb.mxu1 %v828_v37  ;;  %v661_v31 = vld [vmem:[#allocation8 + $0x64] sm:$0xf0]  ;;  %v667_v32 = vld [vmem:[#allocation8 + $0x50] sm:$0xf]  ;;  %v851_v33 = vld [vmem:[#allocation8 + $0x68] sm:$0xf0]  ;;  %v660_v34 = vor.u32 %v850_v29, %v659_v28 }
  0x39   :  { %556 = vmatpush.bf16.msrb.mxu2 %v832_v39  ;;  %v664_v35 = vor.u32 %v847_v30, %v661_v31  ;;  %v668_v36 = vor.u32 %v851_v33, %v667_v32  ;;  %v631_v37 = vld [vmem:[#allocation8 + $0x10] sm:$0xf]  ;;  %v843_v38 = vld [vmem:[#allocation8 + $0x28] sm:$0xf0]  ;;  %v840_v39 = vld [vmem:[#allocation8 + $0x14] sm:$0xf] }
  0x3a   :  { %569 = vmatpush.bf16.msrb.mxu3 %v836_v42  ;;  %536 = vmatpush.bf16.msrb.mxu0 %v656_v53  ;;  %v633_v40 = vld [vmem:[#allocation8 + $0x2c] sm:$0xf0]  ;;  %v639_v41 = vld [vmem:[#allocation8 + $0x18] sm:$0xf]  ;;  %v844_v42 = vld [vmem:[#allocation8 + $0x30] sm:$0xf0]  ;;  %v632_v43 = vor.u32 %v843_v38, %v631_v37 }
  0x3b   :  { %v636_v44 = vor.u32 %v840_v39, %v633_v40  ;;  %v640_v45 = vor.u32 %v844_v42, %v639_v41  ;;  %v903_v46 = vld [vmem:[%s1093_s2] ss:$0 sm:$0xff]  ;;  %v187_v52 = vld [vmem:[#allocation9] sm:$0xff]  ;;  %s1040_s2 = smov [#allocation11]   ;;  %s596_s18 = sshll.u32 %s1096_s5, 4  ;;  %s597_s18 = int_to_ptr.hbm [resolvable:$true] %s596_s18 }
  0x3c   :  { %544 = vmatpush.bf16.msrb.mxu1 %v800_v47  ;;  %v189_v53 = vperm.slane %v187_v52, 0  ;;  %v192_v54 = vperm.slane %v187_v52, 3  ;;  %v190_v59 = vperm.slane %v187_v52, 1  ;;  %v191_v60 = vperm.slane %v187_v52, 2  ;;  %s594_s15 = sshll.u32 %s1040_s2, 4  ;;  %s595_s15 = int_to_ptr.vmem [resolvable:$true] %s594_s15 }
  0x3d   :  { %557 = vmatpush.bf16.msrb.mxu2 %v804_v48  ;;  %v193_v3 = vperm.slane %v187_v52, 4  ;;  %v194_v8 = vperm.slane %v187_v52, 5 }
  0x3e   :  { %570 = vmatpush.bf16.msrb.mxu3 %v808_v49  ;;  %537 = vmatpush.bf16.msrb.mxu0 %v628_v1 }
  0x40   :  { %545 = vmatpush.bf16.msrb.mxu1 %v772_v57 }
  0x41   :  { %558 = vmatpush.bf16.msrb.mxu2 %v776_v58 }
  0x42   :  { %571 = vmatpush.bf16.msrb.mxu3 %v780_v61 }
  0x44   :  { %546 = vmatpush.bf16.msrb.mxu1 %v744_v5 }
  0x45   :  { %559 = vmatpush.bf16.msrb.mxu2 %v748_v6 }
  0x46   :  { %572 = vmatpush.bf16.msrb.mxu3 %v752_v9  ;;  %v195_v9 = vperm.slane %v187_v52, 6 }
  0x48   :  { %547 = vmatpush.bf16.msrb.mxu1 %v716_v13 }
  0x49   :  { %560 = vmatpush.bf16.msrb.mxu2 %v720_v17 }
  0x4a   :  { %573 = vmatpush.bf16.msrb.mxu3 %v724_v18 }
  0x4c   :  { %548 = vmatpush.bf16.msrb.mxu1 %v688_v22 }
  0x4d   :  { %561 = vmatpush.bf16.msrb.mxu2 %v692_v26 }
  0x4e   :  { %574 = vmatpush.bf16.msrb.mxu3 %v696_v27 }
  0x50   :  { %549 = vmatpush.bf16.msrb.mxu1 %v660_v34 }
  0x51   :  { %562 = vmatpush.bf16.msrb.mxu2 %v664_v35 }
  0x52   :  { %575 = vmatpush.bf16.msrb.mxu3 %v668_v36 }
  0x54   :  { %550 = vmatpush.bf16.msrb.mxu1 %v632_v43 }
  0x55   :  { %563 = vmatpush.bf16.msrb.mxu2 %v636_v44 }
  0x56   :  { %576 = vmatpush.bf16.msrb.mxu3 %v640_v45 }
  0x9e   :  { %v115_v47 = vpop.f32.mrf.mxu0 }
  0x9f   :  { %v116_v48 = vadd.f32 %v903_v46, %v115_v47 }
  0xa1   :  { %v119_v49 = vmax.f32 %v116_v48, 0.0 }
  0xa3   :  { %v122_v50 = vpack.c.bf16 %v119_v49, %v119_v49 }
  0xa5   :  { %499 = vmatmul.bf16.vlgmr.msra.gmra.mxu1 %v122_v50  ;;  %512 = vmatmul.bf16.vlgmr.msra.gmra.mxu2 %v122_v50 }
  0xa6   :  { %525 = vmatmul.bf16.vlgmr.msra.gmra.mxu3 %v122_v50  ;;  %538 = vmatmul.bf16.vlgmr.msrb.gmra.mxu0 %v122_v50  ;;  %v117_v51 = vpop.f32.mrf.mxu0 }
  0xb5   :  { %551 = vmatmul.bf16.vlgmr.msrb.gmra.mxu1 %v122_v50  ;;  %564 = vmatmul.bf16.vlgmr.msrb.gmra.mxu2 %v122_v50 }
  0xb6   :  { %577 = vmatmul.bf16.vlgmr.msrb.gmra.mxu3 %v122_v50 }
 0x122   :  { %v500_v55 = vpop.f32.mrf.mxu1 }
 0x123   :  { %v501_v56 = vadd.f32 %v500_v55, %v189_v53  ;;  %v539_v57 = vpop.f32.mrf.mxu0 }
 0x124   :  { %v540_v58 = vadd.f32 %v539_v57, %v192_v54 }
 0x125   :  { %582 = vst [vmem:[#allocation11] sm:$0xff] %v501_v56 }
 0x126   :  { %585 = vst [vmem:[#allocation11 + $0x18] sm:$0xff] %v540_v58 }
 0x128   :  { %v513_v61 = vpop.f32.mrf.mxu2 }
 0x129   :  { %v514_v62 = vadd.f32 %v513_v61, %v190_v59  ;;  %v526_v63 = vpop.f32.mrf.mxu3 }
 0x12a   :  { %v527_v0 = vadd.f32 %v526_v63, %v191_v60  ;;  %v502_v1 = vpop.f32.mrf.mxu1 }
 0x12b   :  { %583 = vst [vmem:[#allocation11 + $0x8] sm:$0xff] %v514_v62  ;;  %v541_v2 = vpop.f32.mrf.mxu0 }
 0x12c   :  { %584 = vst [vmem:[#allocation11 + $0x10] sm:$0xff] %v527_v0 }
 0x130   :  { %v515_v4 = vpop.f32.mrf.mxu2 }
 0x131   :  { %v528_v5 = vpop.f32.mrf.mxu3 }
 0x132   :  { %v552_v6 = vpop.f32.mrf.mxu1 }
 0x133   :  { %v553_v7 = vadd.f32 %v552_v6, %v193_v3 }
 0x135   :  { %586 = vst [vmem:[#allocation11 + $0x20] sm:$0xff] %v553_v7 }
 0x138   :  { %v565_v10 = vpop.f32.mrf.mxu2 }
 0x139   :  { %v566_v11 = vadd.f32 %v565_v10, %v194_v8  ;;  %v578_v12 = vpop.f32.mrf.mxu3 }
 0x13a   :  { %v579_v13 = vadd.f32 %v578_v12, %v195_v9  ;;  %v554_v14 = vpop.f32.mrf.mxu1 }
 0x13b   :  { %587 = vst [vmem:[#allocation11 + $0x28] sm:$0xff] %v566_v11 }
 0x13c   :  { %588 = vst [vmem:[#allocation11 + $0x30] sm:$0xff] %v579_v13 }
 0x13d   :  { %599 = dma.vmem_to_hbm [thread:$0]  %s595_s15, 896, %s597_s18, [#allocation5]  }
 0x140   :  { %v567_v15 = vpop.f32.mrf.mxu2 }
 0x141   :  { %v580_v16 = vpop.f32.mrf.mxu3 }
 0x142   :  { %1030 = dma.done.wait [#allocation5], 896  }
 0x143   :  { %1031 = vsyncadd [#allocation5], 4294966400 }
 0x144   :  { %604 = vsyncpa [#allocation4], 1 }
 0x145   :  { %605 = vsyncpa [#allocation7], 1 }
 0x146   :  { %606 = vsyncpa [#allocation10], 1 }
 0x147   :  { %607 = vsyncpa [#allocation5], 1 }

</bundles_post_ra>
